<compile_context>
chip_gen: v6e
topology: v6e:2x2x1
jax: 0.10.0
libtpu: 0.0.40
codegen_flags: <defaults>
</compile_context>

<pallas_src>
import functools
import numpy as np
import jax
import jax.numpy as jnp
from jax.experimental import pallas as pl
from jax.experimental.pallas import tpu as pltpu


# ------------------------------ Pallas kernel -------------------------------

def _generator_kernel(*refs, n_extra_layers, chw, hw):
    """Fused forward for one batch tile.

    refs = (z, rgb_flat, w0_z, w0_rgb, b0, [w_i, b_i]*, w_head, b_head,
            image_out, logits_out)
    """
    z_ref, rgb_ref, w0z_ref, w0r_ref, b0_ref = refs[:5]
    idx = 5
    extra = []
    for _ in range(n_extra_layers):
        extra.append((refs[idx], refs[idx + 1]))
        idx += 2
    wh_ref, bh_ref = refs[idx], refs[idx + 1]
    img_out_ref, logits_out_ref = refs[idx + 2], refs[idx + 3]

    cdt = w0r_ref.dtype                      # MXU operand dtype (bfloat16)
    rgb = rgb_ref[...]                       # (bb, C*H*W) f32, reused in blend

    # First layer: concat([z, rgb]) @ w0 + b0  ==  z @ w0_z + rgb @ w0_rgb + b0
    h = (jnp.dot(z_ref[...].astype(cdt), w0z_ref[...],
                 preferred_element_type=jnp.float32)
         + jnp.dot(rgb.astype(cdt), w0r_ref[...],
                   preferred_element_type=jnp.float32)
         + b0_ref[...])
    h = jnp.maximum(h, 0.0)

    # Remaining feature-extractor layers: activations stay in-kernel (no HBM).
    for w_ref, b_ref in extra:
        h = jnp.dot(h.astype(cdt), w_ref[...],
                    preferred_element_type=jnp.float32) + b_ref[...]
        h = jnp.maximum(h, 0.0)

    # Fused image + mask head: one 1024-lane matmul, slice at 128-aligned lane.
    y = jnp.dot(h.astype(cdt), wh_ref[...],
                preferred_element_type=jnp.float32) + bh_ref[...]
    img = y[:, :chw]                         # (bb, C*H*W)
    logits = y[:, chw:]                      # (bb, H*W)

    # Sigmoid blend epilogue: sigmoid computed once (EUP), no materialized
    # (bb, C, HW) broadcast; per-channel lane-aligned stores.
    m = jax.nn.sigmoid(logits)               # (bb, H*W) f32
    inv_m = 1.0 - m
    channels = chw // hw
    for c in range(channels):
        sl = slice(c * hw, (c + 1) * hw)
        img_out_ref[:, sl] = img[:, sl] * m + rgb[:, sl] * inv_m
    logits_out_ref[...] = logits
    # NOTE: .detach() on masks only affects autodiff, not forward values.


# ------------------------- parameters & forward pass -------------------------

def init_params(key, noise_dim, hidden_dims, img_shape):
    """nn.Linear-style init (weights stored (in_features, out_features), f32)."""
    C, H, W = img_shape
    in_features = noise_dim + C * H * W
    params = {"fe": []}
    for h in hidden_dims[::-1]:
        key, kw, kb = jax.random.split(key, 3)
        bound = 1.0 / np.sqrt(in_features)
        w = jax.random.uniform(kw, (in_features, h), jnp.float32, -bound, bound)
        b = jax.random.uniform(kb, (1, h), jnp.float32, -bound, bound)
        params["fe"].append((w, b))
        in_features = h
    key, kw, kb = jax.random.split(key, 3)
    bound = 1.0 / np.sqrt(in_features)
    params["image_head"] = (
        jax.random.uniform(kw, (in_features, C * H * W), jnp.float32, -bound, bound),
        jax.random.uniform(kb, (1, C * H * W), jnp.float32, -bound, bound),
    )
    key, kw, kb = jax.random.split(key, 3)
    params["mask_head"] = (
        jax.random.uniform(kw, (in_features, H * W), jnp.float32, -bound, bound),
        jax.random.uniform(kb, (1, H * W), jnp.float32, -bound, bound),
    )
    return params


def generator_forward(params, z, rgb, img_shape, weight_dtype=jnp.bfloat16):
    """Single-pallas_call implementation of GeneratorFullyConnected.forward."""
    C, H, W = img_shape
    assert C == 3, "image head is hard-wired to 3 output channels (as in the module)"
    B, noise_dim = z.shape
    CHW, HW = C * H * W, H * W

    rgb_flat = rgb.reshape(B, CHW).astype(jnp.float32)
    z = z.astype(jnp.float32)

    # --- wrapper-side parameter plumbing (tiny; folded away under jit) ------
    fe = params["fe"]
    w0, b0 = fe[0]
    w0_z = w0[:noise_dim].astype(weight_dtype)       # (noise_dim, h0)
    w0_rgb = w0[noise_dim:].astype(weight_dtype)     # (C*H*W,  h0)
    extra = [(w.astype(weight_dtype), b) for (w, b) in fe[1:]]
    wi, bi = params["image_head"]
    wm, bm = params["mask_head"]
    w_head = jnp.concatenate([wi, wm], axis=1).astype(weight_dtype)  # (h, CHW+HW)
    b_head = jnp.concatenate([bi, bm], axis=1)                       # (1, CHW+HW)

    # --- grid: batch-tiled, megacore-parallel --------------------------------
    bb = B if B <= 128 else 128
    grid_b = pl.cdiv(B, bb)
    batch_map = lambda b: (b, 0)
    full_map = lambda b: (0, 0)

    in_arrays = [z, rgb_flat, w0_z, w0_rgb, b0]
    in_specs = [
        pl.BlockSpec((bb, noise_dim), batch_map),
        pl.BlockSpec((bb, CHW), batch_map),
        pl.BlockSpec(w0_z.shape, full_map),
        pl.BlockSpec(w0_rgb.shape, full_map),
        pl.BlockSpec(b0.shape, full_map),
    ]
    for w, b in extra:
        in_arrays += [w, b]
        in_specs += [pl.BlockSpec(w.shape, full_map), pl.BlockSpec(b.shape, full_map)]
    in_arrays += [w_head, b_head]
    in_specs += [pl.BlockSpec(w_head.shape, full_map), pl.BlockSpec(b_head.shape, full_map)]

    # --- cost estimate (scheduling hint) -------------------------------------
    h0 = w0.shape[1]
    flops = 2 * B * (noise_dim + CHW) * h0
    k = h0
    for w, _ in fe[1:]:
        flops += 2 * B * w.shape[0] * w.shape[1]
        k = w.shape[1]
    flops += 2 * B * k * (CHW + HW)
    bytes_accessed = int(sum(int(a.size) * a.dtype.itemsize for a in in_arrays)
                         + B * (CHW + HW) * 4)
    ce = pl.CostEstimate(flops=int(flops), transcendentals=int(B * HW),
                         bytes_accessed=bytes_accessed)

    kern = functools.partial(_generator_kernel,
                             n_extra_layers=len(extra), chw=CHW, hw=HW)
    img_flat, logits_flat = pl.pallas_call(
        kern,
        out_shape=(jax.ShapeDtypeStruct((B, CHW), jnp.float32),
                   jax.ShapeDtypeStruct((B, HW), jnp.float32)),
        grid=(grid_b,),
        in_specs=in_specs,
        out_specs=(pl.BlockSpec((bb, CHW), batch_map),
                   pl.BlockSpec((bb, HW), batch_map)),
        compiler_params=pltpu.CompilerParams(dimension_semantics=("parallel",)),
        cost_estimate=ce,
    )(*in_arrays)

    image = img_flat.reshape(B, C, H, W)
    mask_logits = logits_flat.reshape(B, H, W)
    return image, mask_logits


def reference_forward(params, z, rgb, img_shape, weight_dtype=jnp.bfloat16):
    """Pure-JAX reference mirroring the kernel's bf16-operand / f32-accum math."""
    C, H, W = img_shape
    B = z.shape[0]
    x = jnp.concatenate([z, rgb.reshape(B, -1)], axis=1)
    for (w, b) in params["fe"]:
        x = jnp.dot(x.astype(weight_dtype), w.astype(weight_dtype),
                    preferred_element_type=jnp.float32) + b
        x = jnp.maximum(x, 0.0)
    feats = x
    wi, bi = params["image_head"]
    wm, bm = params["mask_head"]
    img = (jnp.dot(feats.astype(weight_dtype), wi.astype(weight_dtype),
                   preferred_element_type=jnp.float32) + bi).reshape(B, C, H, W)
    logits = (jnp.dot(feats.astype(weight_dtype), wm.astype(weight_dtype),
                      preferred_element_type=jnp.float32) + bm).reshape(B, H, W)
    m = jax.nn.sigmoid(logits)[:, None]
    return img * m + rgb * (1.0 - m), logits


# ------------------------------------ main -----------------------------------

if __name__ == "__main__":
    noise_dim = 8
    hidden_dims = [32, 64]            # feature extractor uses hidden_dims[::-1]
    img_shape = (3, 16, 16)           # (C, H, W); image head requires C == 3
    B = 2

    key = jax.random.PRNGKey(0)
    key, kz, krgb, kp = jax.random.split(key, 4)
    z = jax.random.normal(kz, (B, noise_dim), jnp.float32)
    rgb = jax.random.normal(krgb, (B,) + img_shape, jnp.float32)
    params = init_params(kp, noise_dim, hidden_dims, img_shape)

    image, mask_logits = generator_forward(params, z, rgb, img_shape)
    image = jax.block_until_ready(image)
    mask_logits = jax.block_until_ready(mask_logits)

    ref_image, ref_logits = reference_forward(params, z, rgb, img_shape)
    assert image.shape == (B, 3, 16, 16) and mask_logits.shape == (B, 16, 16)
    np.testing.assert_allclose(np.asarray(image), np.asarray(ref_image),
                               rtol=2e-3, atol=2e-3)
    np.testing.assert_allclose(np.asarray(mask_logits), np.asarray(ref_logits),
                               rtol=2e-3, atol=2e-3)

    print("KERNEL_OK")
</pallas_src>

<mosaic_0001>
module attributes {stable_mosaic.version = 11 : i64} {
  func.func @_generator_kernel(%arg0: i32, %arg1: memref<2x8xf32, #tpu.memory_space<vmem>>, %arg2: memref<2x768xf32, #tpu.memory_space<vmem>>, %arg3: memref<8x64xbf16, #tpu.memory_space<vmem>>, %arg4: memref<768x64xbf16, #tpu.memory_space<vmem>>, %arg5: memref<1x64xf32, #tpu.memory_space<vmem>>, %arg6: memref<64x32xbf16, #tpu.memory_space<vmem>>, %arg7: memref<1x32xf32, #tpu.memory_space<vmem>>, %arg8: memref<32x1024xbf16, #tpu.memory_space<vmem>>, %arg9: memref<1x1024xf32, #tpu.memory_space<vmem>>, %arg10: memref<2x768xf32, #tpu.memory_space<vmem>>, %arg11: memref<2x256xf32, #tpu.memory_space<vmem>>) attributes {dimension_semantics = [#tpu.dimension_semantics<parallel>], iteration_bounds = array<i64: 1>, scalar_prefetch = 0 : i64, scratch_operands = 0 : i64, tpu.core_type = #tpu.core_type<tc>, window_params = [{transform_indices = @transform_0, window_bounds = array<i64: 2, 8>}, {transform_indices = @transform_1, window_bounds = array<i64: 2, 768>}, {pipeline_mode = #tpu.pipeline_mode<synchronous>, transform_indices = @transform_2, window_bounds = array<i64: 8, 64>}, {pipeline_mode = #tpu.pipeline_mode<synchronous>, transform_indices = @transform_3, window_bounds = array<i64: 768, 64>}, {pipeline_mode = #tpu.pipeline_mode<synchronous>, transform_indices = @transform_4, window_bounds = array<i64: 1, 64>}, {pipeline_mode = #tpu.pipeline_mode<synchronous>, transform_indices = @transform_5, window_bounds = array<i64: 64, 32>}, {pipeline_mode = #tpu.pipeline_mode<synchronous>, transform_indices = @transform_6, window_bounds = array<i64: 1, 32>}, {pipeline_mode = #tpu.pipeline_mode<synchronous>, transform_indices = @transform_7, window_bounds = array<i64: 32, 1024>}, {pipeline_mode = #tpu.pipeline_mode<synchronous>, transform_indices = @transform_8, window_bounds = array<i64: 1, 1024>}, {transform_indices = @transform_9, window_bounds = array<i64: 2, 768>}, {transform_indices = @transform_10, window_bounds = array<i64: 2, 256>}]} {
    %c0 = arith.constant 0 : index
    %c0_0 = arith.constant 0 : index
    %0 = vector.load %arg2[%c0, %c0_0] : memref<2x768xf32, #tpu.memory_space<vmem>>, vector<2x768xf32>
    %c0_1 = arith.constant 0 : index
    %c0_2 = arith.constant 0 : index
    %1 = vector.load %arg1[%c0_1, %c0_2] : memref<2x8xf32, #tpu.memory_space<vmem>>, vector<2x8xf32>
    %2 = arith.truncf %1 : vector<2x8xf32> to vector<2x8xbf16>
    %c0_3 = arith.constant 0 : index
    %c0_4 = arith.constant 0 : index
    %3 = vector.load %arg3[%c0_3, %c0_4] : memref<8x64xbf16, #tpu.memory_space<vmem>>, vector<8x64xbf16>
    %cst = arith.constant dense<0.000000e+00> : vector<2x64xf32>
    %4 = tpu.matmul %2, %3, %cst {dimension_numbers = #tpu.dot_dimension_numbers<[1], [0], [0], [1], [0, 0, 1, 1], [], []>} : vector<2x8xbf16>, vector<8x64xbf16>, vector<2x64xf32> -> vector<2x64xf32>
    %5 = arith.truncf %0 : vector<2x768xf32> to vector<2x768xbf16>
    %c0_5 = arith.constant 0 : index
    %c0_6 = arith.constant 0 : index
    %6 = vector.load %arg4[%c0_5, %c0_6] : memref<768x64xbf16, #tpu.memory_space<vmem>>, vector<768x64xbf16>
    %cst_7 = arith.constant dense<0.000000e+00> : vector<2x64xf32>
    %7 = tpu.matmul %5, %6, %cst_7 {dimension_numbers = #tpu.dot_dimension_numbers<[1], [0], [0], [1], [0, 0, 1, 1], [], []>} : vector<2x768xbf16>, vector<768x64xbf16>, vector<2x64xf32> -> vector<2x64xf32>
    %8 = arith.addf %4, %7 : vector<2x64xf32>
    %c0_8 = arith.constant 0 : index
    %c0_9 = arith.constant 0 : index
    %9 = vector.load %arg5[%c0_8, %c0_9] : memref<1x64xf32, #tpu.memory_space<vmem>>, vector<1x64xf32>
    %10 = vector.broadcast %9 : vector<1x64xf32> to vector<2x64xf32>
    %11 = arith.addf %8, %10 : vector<2x64xf32>
    %cst_10 = arith.constant 0.000000e+00 : f32
    %12 = vector.broadcast %cst_10 : f32 to vector<2x64xf32>
    %13 = arith.maximumf %11, %12 : vector<2x64xf32>
    %14 = arith.truncf %13 : vector<2x64xf32> to vector<2x64xbf16>
    %c0_11 = arith.constant 0 : index
    %c0_12 = arith.constant 0 : index
    %15 = vector.load %arg6[%c0_11, %c0_12] : memref<64x32xbf16, #tpu.memory_space<vmem>>, vector<64x32xbf16>
    %cst_13 = arith.constant dense<0.000000e+00> : vector<2x32xf32>
    %16 = tpu.matmul %14, %15, %cst_13 {dimension_numbers = #tpu.dot_dimension_numbers<[1], [0], [0], [1], [0, 0, 1, 1], [], []>} : vector<2x64xbf16>, vector<64x32xbf16>, vector<2x32xf32> -> vector<2x32xf32>
    %c0_14 = arith.constant 0 : index
    %c0_15 = arith.constant 0 : index
    %17 = vector.load %arg7[%c0_14, %c0_15] : memref<1x32xf32, #tpu.memory_space<vmem>>, vector<1x32xf32>
    %18 = vector.broadcast %17 : vector<1x32xf32> to vector<2x32xf32>
    %19 = arith.addf %16, %18 : vector<2x32xf32>
    %cst_16 = arith.constant 0.000000e+00 : f32
    %20 = vector.broadcast %cst_16 : f32 to vector<2x32xf32>
    %21 = arith.maximumf %19, %20 : vector<2x32xf32>
    %22 = arith.truncf %21 : vector<2x32xf32> to vector<2x32xbf16>
    %c0_17 = arith.constant 0 : index
    %c0_18 = arith.constant 0 : index
    %23 = vector.load %arg8[%c0_17, %c0_18] : memref<32x1024xbf16, #tpu.memory_space<vmem>>, vector<32x1024xbf16>
    %cst_19 = arith.constant dense<0.000000e+00> : vector<2x1024xf32>
    %24 = tpu.matmul %22, %23, %cst_19 {dimension_numbers = #tpu.dot_dimension_numbers<[1], [0], [0], [1], [0, 0, 1, 1], [], []>} : vector<2x32xbf16>, vector<32x1024xbf16>, vector<2x1024xf32> -> vector<2x1024xf32>
    %c0_20 = arith.constant 0 : index
    %c0_21 = arith.constant 0 : index
    %25 = vector.load %arg9[%c0_20, %c0_21] : memref<1x1024xf32, #tpu.memory_space<vmem>>, vector<1x1024xf32>
    %26 = vector.broadcast %25 : vector<1x1024xf32> to vector<2x1024xf32>
    %27 = arith.addf %24, %26 : vector<2x1024xf32>
    %28 = vector.extract_strided_slice %27 {offsets = [0, 0], sizes = [2, 768], strides = [1, 1]} : vector<2x1024xf32> to vector<2x768xf32>
    %29 = vector.extract_strided_slice %27 {offsets = [0, 768], sizes = [2, 256], strides = [1, 1]} : vector<2x1024xf32> to vector<2x256xf32>
    %30 = arith.negf %29 : vector<2x256xf32>
    %31 = math.exp %30 : vector<2x256xf32>
    %cst_22 = arith.constant 1.000000e+00 : f32
    %32 = vector.broadcast %cst_22 : f32 to vector<2x256xf32>
    %33 = arith.addf %32, %31 : vector<2x256xf32>
    %34 = arith.divf %32, %33 : vector<2x256xf32>
    %cst_23 = arith.constant 1.000000e+00 : f32
    %35 = vector.broadcast %cst_23 : f32 to vector<2x256xf32>
    %36 = arith.subf %35, %34 : vector<2x256xf32>
    %37 = vector.extract_strided_slice %28 {offsets = [0, 0], sizes = [2, 256], strides = [1, 1]} : vector<2x768xf32> to vector<2x256xf32>
    %38 = arith.mulf %37, %34 : vector<2x256xf32>
    %39 = vector.extract_strided_slice %0 {offsets = [0, 0], sizes = [2, 256], strides = [1, 1]} : vector<2x768xf32> to vector<2x256xf32>
    %40 = arith.mulf %39, %36 : vector<2x256xf32>
    %41 = arith.addf %38, %40 : vector<2x256xf32>
    %c0_24 = arith.constant 0 : index
    %c0_25 = arith.constant 0 : index
    %42 = vector.load %arg10[%c0_24, %c0_25] : memref<2x768xf32, #tpu.memory_space<vmem>>, vector<2x256xf32>
    tpu.vector_store %arg10[%c0_24, %c0_25], %41 {strides = array<i32>} : memref<2x768xf32, #tpu.memory_space<vmem>>, vector<2x256xf32>,
    %43 = vector.extract_strided_slice %28 {offsets = [0, 256], sizes = [2, 256], strides = [1, 1]} : vector<2x768xf32> to vector<2x256xf32>
    %44 = arith.mulf %43, %34 : vector<2x256xf32>
    %45 = vector.extract_strided_slice %0 {offsets = [0, 256], sizes = [2, 256], strides = [1, 1]} : vector<2x768xf32> to vector<2x256xf32>
    %46 = arith.mulf %45, %36 : vector<2x256xf32>
    %47 = arith.addf %44, %46 : vector<2x256xf32>
    %c0_26 = arith.constant 0 : index
    %c256 = arith.constant 256 : index
    %48 = vector.load %arg10[%c0_26, %c256] : memref<2x768xf32, #tpu.memory_space<vmem>>, vector<2x256xf32>
    tpu.vector_store %arg10[%c0_26, %c256], %47 {strides = array<i32>} : memref<2x768xf32, #tpu.memory_space<vmem>>, vector<2x256xf32>,
    %49 = vector.extract_strided_slice %28 {offsets = [0, 512], sizes = [2, 256], strides = [1, 1]} : vector<2x768xf32> to vector<2x256xf32>
    %50 = arith.mulf %49, %34 : vector<2x256xf32>
    %51 = vector.extract_strided_slice %0 {offsets = [0, 512], sizes = [2, 256], strides = [1, 1]} : vector<2x768xf32> to vector<2x256xf32>
    %52 = arith.mulf %51, %36 : vector<2x256xf32>
    %53 = arith.addf %50, %52 : vector<2x256xf32>
    %c0_27 = arith.constant 0 : index
    %c512 = arith.constant 512 : index
    %54 = vector.load %arg10[%c0_27, %c512] : memref<2x768xf32, #tpu.memory_space<vmem>>, vector<2x256xf32>
    tpu.vector_store %arg10[%c0_27, %c512], %53 {strides = array<i32>} : memref<2x768xf32, #tpu.memory_space<vmem>>, vector<2x256xf32>,
    %c0_28 = arith.constant 0 : index
    %c0_29 = arith.constant 0 : index
    %55 = vector.load %arg11[%c0_28, %c0_29] : memref<2x256xf32, #tpu.memory_space<vmem>>, vector<2x256xf32>
    tpu.vector_store %arg11[%c0_28, %c0_29], %29 {strides = array<i32>} : memref<2x256xf32, #tpu.memory_space<vmem>>, vector<2x256xf32>,
    return
  }
  func.func @transform_0(%arg0: i32) -> (i32, i32) {
    %c0_i32 = arith.constant 0 : i32
    %c0_i32_0 = arith.constant 0 : i32
    return %arg0, %c0_i32 : i32, i32
  }
  func.func @transform_1(%arg0: i32) -> (i32, i32) {
    %c0_i32 = arith.constant 0 : i32
    %c0_i32_0 = arith.constant 0 : i32
    return %arg0, %c0_i32 : i32, i32
  }
  func.func @transform_2(%arg0: i32) -> (i32, i32) {
    %c0_i32 = arith.constant 0 : i32
    %c0_i32_0 = arith.constant 0 : i32
    %c0_i32_1 = arith.constant 0 : i32
    return %c0_i32, %c0_i32_0 : i32, i32
  }
  func.func @transform_3(%arg0: i32) -> (i32, i32) {
    %c0_i32 = arith.constant 0 : i32
    %c0_i32_0 = arith.constant 0 : i32
    %c0_i32_1 = arith.constant 0 : i32
    return %c0_i32, %c0_i32_0 : i32, i32
  }
  func.func @transform_4(%arg0: i32) -> (i32, i32) {
    %c0_i32 = arith.constant 0 : i32
    %c0_i32_0 = arith.constant 0 : i32
    %c0_i32_1 = arith.constant 0 : i32
    return %c0_i32, %c0_i32_0 : i32, i32
  }
  func.func @transform_5(%arg0: i32) -> (i32, i32) {
    %c0_i32 = arith.constant 0 : i32
    %c0_i32_0 = arith.constant 0 : i32
    %c0_i32_1 = arith.constant 0 : i32
    return %c0_i32, %c0_i32_0 : i32, i32
  }
  func.func @transform_6(%arg0: i32) -> (i32, i32) {
    %c0_i32 = arith.constant 0 : i32
    %c0_i32_0 = arith.constant 0 : i32
    %c0_i32_1 = arith.constant 0 : i32
    return %c0_i32, %c0_i32_0 : i32, i32
  }
  func.func @transform_7(%arg0: i32) -> (i32, i32) {
    %c0_i32 = arith.constant 0 : i32
    %c0_i32_0 = arith.constant 0 : i32
    %c0_i32_1 = arith.constant 0 : i32
    return %c0_i32, %c0_i32_0 : i32, i32
  }
  func.func @transform_8(%arg0: i32) -> (i32, i32) {
    %c0_i32 = arith.constant 0 : i32
    %c0_i32_0 = arith.constant 0 : i32
    %c0_i32_1 = arith.constant 0 : i32
    return %c0_i32, %c0_i32_0 : i32, i32
  }
  func.func @transform_9(%arg0: i32) -> (i32, i32) {
    %c0_i32 = arith.constant 0 : i32
    %c0_i32_0 = arith.constant 0 : i32
    return %arg0, %c0_i32 : i32, i32
  }
  func.func @transform_10(%arg0: i32) -> (i32, i32) {
    %c0_i32 = arith.constant 0 : i32
    %c0_i32_0 = arith.constant 0 : i32
    return %arg0, %c0_i32 : i32, i32
  }
}

</mosaic_0001>

<bundles_post_ra>
// kernel: tpu_custom_call.1
= control target key start
LH: loop header
LB: loop body
LE: loop exit
PB: predicated region body
PF: predicated region fallthrough
CT: control target
= control target key end

     0   :  { %16 = vsyncpa [#allocation3], 0  ;;  %v48_v30 = vlaneseq  ;;  %v1469_v35 = vmov 1983009808   ;;  %v1470_v38 = vmov 0.0   ;;  %vm589_vm0 = vcmask 1043456   ;;  %s1817_s0 = inlined_call_operand.vmem [shape: f32[2,8], index: 0, kind: input, shape index: {}]   ;;  %s1818_s1 = inlined_call_operand.vmem [shape: f32[2,768], index: 1, kind: input, shape index: {}]   ;;  %s1819_s2 = inlined_call_operand.vmem [shape: bf16[8,64], index: 2, kind: input, shape index: {}]   ;;  %s1820_s3 = inlined_call_operand.vmem [shape: bf16[768,64], index: 3, kind: input, shape index: {}]   ;;  %s1821_s4 = inlined_call_operand.vmem [shape: f32[1,64], index: 4, kind: input, shape index: {}]   ;;  %s1822_s5 = inlined_call_operand.vmem [shape: bf16[64,32], index: 5, kind: input, shape index: {}]   ;;  %s1823_s6 = inlined_call_operand.vmem [shape: f32[1,32], index: 6, kind: input, shape index: {}]   ;;  %s1824_s7 = inlined_call_operand.vmem [shape: bf16[32,1024], index: 7, kind: input, shape index: {}]   ;;  %s1825_s8 = inlined_call_operand.vmem [shape: f32[1,1024], index: 8, kind: input, shape index: {}]   ;;  %s1826_s9 = inlined_call_operand.hbm [shape: f32[2,768], index: 9, kind: output, shape index: {0}]   ;;  %s1827_s10 = inlined_call_operand.hbm [shape: f32[2,256], index: 10, kind: output, shape index: {1}]  }
   0x1   :  { %v1364_v0 = vld [vmem:[%s1820_s3 + $0x78] sm:$0xff]   ;;  %v1368_v4 = vld [vmem:[%s1820_s3 + $0x70] sm:$0xff]   ;;  %v1372_v8 = vld [vmem:[%s1820_s3 + $0x68] sm:$0xff]   ;;  %v46_v36 = vunpack.c.l.s4 %v1469_v35  ;;  %vm1471_vm1 = vmmov 0   ;;  %vm585_vm2 = vcmask 64512  }
   0x2   :  { %v1365_v1 = vld [vmem:[%s1820_s3 + $0xf8] sm:$0xff]   ;;  %1267 = vmatprep.subr.bf16.mxu0 %v1364_v0  ;;  %v1369_v5 = vld [vmem:[%s1820_s3 + $0xf0] sm:$0xff]   ;;  %v1373_v9 = vld [vmem:[%s1820_s3 + $0xe8] sm:$0xff]   ;;  %v1634_v37 = vshrl.u32 %v48_v30, 7 }
   0x3   :  { %v1366_v2 = vld [vmem:[%s1820_s3 + $0x38] sm:$0xff]   ;;  %1289 = vmatprep.subr.bf16.mxu1 %v1365_v1  ;;  %v1370_v6 = vld [vmem:[%s1820_s3 + $0x30] sm:$0xff]   ;;  %v1374_v10 = vld [vmem:[%s1820_s3 + $0x28] sm:$0xff]   ;;  %v47_v39 = vunpack.c.0.s8 %v46_v36 }
   0x4   :  { %v1367_v3 = vld [vmem:[%s1820_s3 + $0xb8] sm:$0xff]   ;;  %1268 = vmatpush3.bf16.msra.mxu0 %v1366_v2  ;;  %v1371_v7 = vld [vmem:[%s1820_s3 + $0xb0] sm:$0xff]   ;;  %v1375_v11 = vld [vmem:[%s1820_s3 + $0xa8] sm:$0xff]  }
   0x5   :  { %1290 = vmatpush3.bf16.msra.mxu1 %v1367_v3  ;;  %1269 = vmatprep.subr.bf16.mxu0 %v1368_v4  ;;  %v1376_v12 = vld [vmem:[%s1820_s3 + $0x60] sm:$0xff]   ;;  %v1380_v16 = vld [vmem:[%s1820_s3 + $0x58] sm:$0xff]   ;;  %v1384_v20 = vld [vmem:[%s1820_s3 + $0x50] sm:$0xff]   ;;  %v1640_v41 = vsub.s32 %v47_v39, %v1634_v37 }
   0x6   :  { %1291 = vmatprep.subr.bf16.mxu1 %v1369_v5  ;;  %v1377_v13 = vld [vmem:[%s1820_s3 + $0xe0] sm:$0xff]   ;;  %v1381_v17 = vld [vmem:[%s1820_s3 + $0xd8] sm:$0xff]   ;;  %v1385_v21 = vld [vmem:[%s1820_s3 + $0xd0] sm:$0xff]  }
   0x7   :  { %v1378_v14 = vld [vmem:[%s1820_s3 + $0x20] sm:$0xff]   ;;  %v1382_v18 = vld [vmem:[%s1820_s3 + $0x18] sm:$0xff]   ;;  %v1386_v22 = vld [vmem:[%s1820_s3 + $0x10] sm:$0xff]  }
   0x8   :  { %1270 = vmatpush3.bf16.msra.mxu0 %v1370_v6  ;;  %v1379_v15 = vld [vmem:[%s1820_s3 + $0xa0] sm:$0xff]   ;;  %v1383_v19 = vld [vmem:[%s1820_s3 + $0x98] sm:$0xff]   ;;  %v1387_v23 = vld [vmem:[%s1820_s3 + $0x90] sm:$0xff]  }
   0x9   :  { %1292 = vmatpush3.bf16.msra.mxu1 %v1371_v7  ;;  %1271 = vmatprep.subr.bf16.mxu0 %v1372_v8  ;;  %v1388_v24 = vld [vmem:[%s1820_s3 + $0x48] sm:$0xff]   ;;  %v1392_v28 = vld [vmem:[%s1820_s3 + $0x40] sm:$0xff]   ;;  %v1397_v34 = vld [vmem:[%s1820_s3 + $0x178] sm:$0xff]  }
   0xa   :  { %1293 = vmatprep.subr.bf16.mxu1 %v1373_v9  ;;  %v1389_v25 = vld [vmem:[%s1820_s3 + $0xc8] sm:$0xff]   ;;  %v1393_v29 = vld [vmem:[%s1820_s3 + $0xc0] sm:$0xff]   ;;  %v1398_v50 = vld [vmem:[%s1820_s3 + $0x138] sm:$0xff]  }
   0xb   :  { %v1390_v26 = vld [vmem:[%s1820_s3 + $0x8] sm:$0xff]   ;;  %v1394_v31 = vld [vmem:[%s1820_s3] sm:$0xff]   ;;  %v1399_v51 = vld [vmem:[%s1820_s3 + $0x170] sm:$0xff]  }
   0xc   :  { %1272 = vmatpush3.bf16.msra.mxu0 %v1374_v10  ;;  %v1391_v27 = vld [vmem:[%s1820_s3 + $0x88] sm:$0xff]   ;;  %v1395_v32 = vld [vmem:[%s1820_s3 + $0x80] sm:$0xff]   ;;  %v1400_v52 = vld [vmem:[%s1820_s3 + $0x130] sm:$0xff]  }
   0xd   :  { %1294 = vmatpush3.bf16.msra.mxu1 %v1375_v11  ;;  %1273 = vmatprep.subr.bf16.mxu0 %v1376_v12  ;;  %v1629_v33 = vld [vmem:[%s1818_s1] sm:$0xff]  ;;  %v1401_v53 = vld [vmem:[%s1820_s3 + $0x168] sm:$0xff]  }
   0xe   :  { %1295 = vmatprep.subr.bf16.mxu1 %v1377_v13  ;;  %v44_v40 = vcombine.high %v1629_v33, %v1629_v33  ;;  %v51_v42 = vrot.slane %v1629_v33, %v1640_v41  ;;  %v41_v54 = vld [vmem:[%s1819_s2] sm:$0xf]  ;;  %v1665_v55 = vld [vmem:[%s1818_s1 + $0x8] sm:$0xf] }
   0xf   :  { %v1402_v56 = vld [vmem:[%s1820_s3 + $0x128] sm:$0xff]   ;;  %v591_v57 = vsel %vm589_vm0, %v41_v54, 0  ;;  %v67_v58 = vrot.slane %v1665_v55, %v1640_v41  ;;  %v39_v59 = vld [vmem:[%s1817_s0] sm:$0x3] }
  0x10   :  { %1274 = vmatpush3.bf16.msra.mxu0 %v1378_v14  ;;  %v58_v43 = vrot.slane %v44_v40, %v1640_v41  ;;  %v59_v44 = vcombine.high %v51_v42, %v51_v42  ;;  %v75_v46 = vpack.c.bf16 %v51_v42, %v51_v42  ;;  %v40_v60 = vpack.c.bf16 %v39_v59, %v39_v59  ;;  %v1403_v62 = vld [vmem:[%s1820_s3 + $0x160] sm:$0xff]  }
  0x11   :  { %1296 = vmatpush3.bf16.msra.mxu1 %v1379_v15  ;;  %1275 = vmatprep.subr.bf16.mxu0 %v1380_v16  ;;  %v68_v61 = vcombine.high %v67_v58, %v67_v58 }
  0x12   :  { %1297 = vmatprep.subr.bf16.mxu1 %v1381_v17  ;;  %v60_v45 = vcombine.high %v58_v43, %v58_v43  ;;  %v77_v47 = vpack.c.bf16 %v58_v43, %v58_v43  ;;  %v76_v48 = vpack.c.bf16 %v59_v44, %v59_v44 }
  0x14   :  { %1276 = vmatpush3.bf16.msra.mxu0 %v1382_v18  ;;  %v78_v49 = vpack.c.bf16 %v60_v45, %v60_v45  ;;  %497 = vmatprep.mubr.bf16.mxu0 %v76_v48 }
  0x15   :  { %1298 = vmatpush3.bf16.msra.mxu1 %v1383_v19  ;;  %1277 = vmatprep.subr.bf16.mxu0 %v1384_v20 }
  0x16   :  { %1299 = vmatprep.subr.bf16.mxu1 %v1385_v21  ;;  %537 = vmatprep.mubr.bf16.mxu1 %v78_v49 }
  0x18   :  { %1278 = vmatpush3.bf16.msra.mxu0 %v1386_v22 }
  0x19   :  { %1300 = vmatpush3.bf16.msra.mxu1 %v1387_v23  ;;  %1279 = vmatprep.subr.bf16.mxu0 %v1388_v24 }
  0x1a   :  { %1301 = vmatprep.subr.bf16.mxu1 %v1389_v25 }
  0x1c   :  { %1280 = vmatpush3.bf16.msra.mxu0 %v1390_v26 }
  0x1d   :  { %1302 = vmatpush3.bf16.msra.mxu1 %v1391_v27  ;;  %1281 = vmatprep.subr.bf16.mxu0 %v1392_v28 }
  0x1e   :  { %1303 = vmatprep.subr.bf16.mxu1 %v1393_v29 }
  0x20   :  { %1282 = vmatpush3.bf16.msra.mxu0 %v1394_v31 }
  0x21   :  { %1304 = vmatpush3.bf16.msra.mxu1 %v1395_v32  ;;  %1311 = vmatprep.subr.bf16.mxu0 %v1397_v34 }
  0x22   :  { %1340 = vmatprep.subr.bf16.mxu1 %v1470_v38 }
  0x23   :  { %498 = vmatmul.mubr.bf16.vlgmr.msra.gmra.mxu0 %v75_v46 }
  0x24   :  { %538 = vmatmul.mubr.bf16.vlgmr.msra.gmra.mxu1 %v77_v47  ;;  %1312 = vmatpush3.bf16.msra.mxu0 %v1398_v50 }
  0x25   :  { %1342 = vmatprep.mubr.msk.bf16.mxu1 %vm1471_vm1, %v1470_v38  ;;  %1313 = vmatprep.subr.bf16.mxu0 %v1399_v51 }
  0x26   :  { %1341 = vmatpush3.bf16.msra.mxu1 %v591_v57 }
  0x27   :  { %1346 = vmatprep.subr.bf16.mxu1 %v1470_v38 }
  0x28   :  { %1314 = vmatpush3.bf16.msra.mxu0 %v1400_v52 }
  0x29   :  { %1315 = vmatprep.subr.bf16.mxu0 %v1401_v53 }
  0x2a   :  { %17 = vsyncpa [#allocation5], 0  ;;  %v80_v63 = vpack.c.bf16 %v68_v61, %v68_v61  ;;  %v1404_v0 = vld [vmem:[%s1820_s3 + $0x120] sm:$0xff]   ;;  %v1405_v1 = vld [vmem:[%s1820_s3 + $0x158] sm:$0xff]   ;;  %v79_v9 = vpack.c.bf16 %v67_v58, %v67_v58  ;;  %vm682_vm3 = vcmask 523264   ;;  %vm866_vm4 = vcmask 261120  }
  0x2b   :  { %v1406_v2 = vld [vmem:[%s1820_s3 + $0x118] sm:$0xff]   ;;  %v1407_v3 = vld [vmem:[%s1820_s3 + $0x150] sm:$0xff]   ;;  %v1409_v5 = vld [vmem:[%s1820_s3 + $0x148] sm:$0xff]   ;;  %s1473_s27 = smov [#allocation4]  }
  0x2c   :  { %1343 = vmatmul.mubr.msk.bf16.vlgmr.msra.gmra.mxu1 %vm585_vm2, %v40_v60  ;;  %1316 = vmatpush3.bf16.msra.mxu0 %v1402_v56  ;;  %v1408_v4 = vld [vmem:[%s1820_s3 + $0x110] sm:$0xff]   ;;  %v1410_v6 = vld [vmem:[%s1820_s3 + $0x108] sm:$0xff]   ;;  %v1411_v7 = vld [vmem:[%s1820_s3 + $0x140] sm:$0xff]   ;;  %s1173_s28 = sshll.u32 %s1473_s27, 4  ;;  %s1174_s28 = int_to_ptr.vmem [resolvable:$true] %s1173_s28 }
  0x2d   :  { %577 = vmatprep.mubr.bf16.mxu0 %v80_v63  ;;  %1317 = vmatprep.subr.bf16.mxu0 %v1403_v62  ;;  %v1412_v8 = vld [vmem:[%s1820_s3 + $0x100] sm:$0xff]   ;;  %v1413_v10 = vld [vmem:[%s1822_s5 + $0x18] sm:$0xff]   ;;  %v1414_v11 = vld [vmem:[%s1822_s5 + $0x10] sm:$0xff]   ;;  %p1430_p1 = scmp.lt.s32.totalorder %s1174_s28, %s1174_s28 }
  0x2e   :  { %1354 = vmatprep.mubr.msk.bf16.mxu1 %vm1471_vm1, %v1470_v38  ;;  %1347 = vmatpush3.bf16.msra.mxu1 %v1413_v10  ;;  %v1415_v12 = vld [vmem:[%s1822_s5 + $0x8] sm:$0xff]   ;;  %v1416_v13 = vld [vmem:[%s1822_s5] sm:$0xff]   ;;  %v739_v60 = vld [vmem:[%s1824_s7 + $0x58] sm:$0xff] }
  0x2f   :  { %1348 = vmatprep.subr.bf16.mxu1 %v1470_v38  ;;  %v737_v14 = vld [vmem:[%s1824_s7 + $0x48] sm:$0xff]  ;;  %v736_v16 = vld [vmem:[%s1824_s7 + $0x40] sm:$0xff]  ;;  %v743_v61 = vld [vmem:[%s1824_s7 + $0x78] sm:$0xff] }
  0x30   :  { %1318 = vmatpush3.bf16.msra.mxu0 %v1404_v0  ;;  %v741_v15 = vld [vmem:[%s1824_s7 + $0x68] sm:$0xff]  ;;  %v740_v19 = vld [vmem:[%s1824_s7 + $0x60] sm:$0xff]  ;;  %v738_v62 = vld [vmem:[%s1824_s7 + $0x50] sm:$0xff]  ;;  %v1256_v63 = vcombine.high %v739_v60, %v743_v61 }
  0x31   :  { %1319 = vmatprep.subr.bf16.mxu0 %v1405_v1  ;;  %v1251_v17 = vcombine.low %v737_v14, %v741_v15  ;;  %v1252_v18 = vcombine.high %v737_v14, %v741_v15  ;;  %v1249_v20 = vcombine.low %v736_v16, %v740_v19  ;;  %v1250_v21 = vcombine.high %v736_v16, %v740_v19  ;;  %v1234_v45 = vld [vmem:[%s1821_s4] ss:$0 sm:$0xff]  ;;  %v729_v51 = vld [vmem:[%s1824_s7 + $0x8] sm:$0xff]  ;;  %v742_v0 = vld [vmem:[%s1824_s7 + $0x70] sm:$0xff] }
  0x32   :  { %1349 = vmatpush3.bf16.msra.mxu1 %v1414_v11  ;;  %v733_v52 = vld [vmem:[%s1824_s7 + $0x28] sm:$0xff]  ;;  %v728_v53 = vld [vmem:[%s1824_s7] sm:$0xff]  ;;  %v1472_v1 = vmov 0   ;;  %v735_v10 = vld [vmem:[%s1824_s7 + $0x38] sm:$0xff] }
  0x33   :  { %1350 = vmatprep.subr.bf16.mxu1 %v1470_v38  ;;  %v1244_v54 = vcombine.high %v729_v51, %v733_v52  ;;  %v732_v56 = vld [vmem:[%s1824_s7 + $0x20] sm:$0xff]  ;;  %v1243_v57 = vcombine.low %v729_v51, %v733_v52  ;;  %v730_v11 = vld [vmem:[%s1824_s7 + $0x10] sm:$0xff] }
  0x34   :  { %1320 = vmatpush3.bf16.msra.mxu0 %v1406_v2  ;;  %v1241_v58 = vcombine.low %v728_v53, %v732_v56  ;;  %v1242_v59 = vcombine.high %v728_v53, %v732_v56  ;;  %v1255_v2 = vcombine.low %v739_v60, %v743_v61 }
  0x35   :  { %1321 = vmatprep.subr.bf16.mxu0 %v1407_v3  ;;  %v1253_v3 = vcombine.low %v738_v62, %v742_v0 }
  0x36   :  { %1351 = vmatpush3.bf16.msra.mxu1 %v1415_v12  ;;  %v734_v12 = vld [vmem:[%s1824_s7 + $0x30] sm:$0xff] }
  0x37   :  { %1352 = vmatprep.subr.bf16.mxu1 %v1470_v38 }
  0x38   :  { %1322 = vmatpush3.bf16.msra.mxu0 %v1408_v4  ;;  %v1254_v4 = vcombine.high %v738_v62, %v742_v0 }
  0x39   :  { %1323 = vmatprep.subr.bf16.mxu0 %v1409_v5  ;;  %v1235_v5 = vld [vmem:[%s1823_s6] ss:$0 sm:$0xff] }
  0x3a   :  { %1353 = vmatpush3.bf16.msra.mxu1 %v1416_v13 }
  0x3b   :  { %882 = vmatprep.subr.bf16.mxu1 %v1250_v21 }
  0x3c   :  { %1324 = vmatpush3.bf16.msra.mxu0 %v1410_v6 }
  0x3d   :  { %1325 = vmatprep.subr.bf16.mxu0 %v1411_v7 }
  0x40   :  { %1326 = vmatpush3.bf16.msra.mxu0 %v1412_v8  ;;  %v731_v8 = vld [vmem:[%s1824_s7 + $0x18] sm:$0xff] }
  0x41   :  { %923 = vmatprep.subr.bf16.mxu0 %v1252_v18  ;;  %v1248_v16 = vcombine.high %v731_v8, %v735_v10  ;;  %v1247_v19 = vcombine.low %v731_v8, %v735_v10 }
  0x43   :  { %578 = vmatmul.mubr.bf16.vlgmr.msra.gmra.mxu0 %v79_v9 }
  0x44   :  { %924 = vmatpush1.bf16.msra.mxu0 %v1251_v17  ;;  %943 = vmatprep.mubr.bf16.mxu0 %v1472_v1  ;;  %v1246_v17 = vcombine.high %v730_v11, %v734_v12 }
  0x45   :  { %925 = vmatprep.subr.bf16.mxu0 %v1244_v54 }
  0x48   :  { %926 = vmatpush1.bf16.msra.mxu0 %v1243_v57 }
  0x49   :  { %1005 = vmatprep.subr.bf16.mxu0 %v1256_v63 }
  0xe3   :  { %v1283_v22 = vpop.f32.mrf.mxu0 }
  0xe4   :  { %v1305_v23 = vpop.f32.mrf.mxu1 }
  0xe5   :  { %v1284_v24 = vpop.f32.mrf.mxu0 }
  0xe6   :  { %v1306_v25 = vpop.f32.mrf.mxu1  ;;  %v1285_v35 = vadd.f32 %v1284_v24, %v1283_v22 }
  0xe7   :  { %v1286_v26 = vpop.f32.mrf.mxu0  ;;  %v1307_v36 = vadd.f32 %v1306_v25, %v1305_v23  ;;  %v772_v23 = vsub.s32 6, %v1634_v37 }
  0xe8   :  { %v1308_v27 = vpop.f32.mrf.mxu1  ;;  %v776_v26 = vsub.s32 7, %v1634_v37 }
  0xe9   :  { %v1287_v28 = vpop.f32.mrf.mxu0  ;;  %v540_v40 = vadd.f32 %v1307_v36, %v1285_v35  ;;  %v744_v27 = vld [vmem:[%s1825_s8] sm:$0xff]  ;;  %s1425_s8 = scalar_lea.vmem %s1174_s28, 64 }
  0xea   :  { %v1309_v29 = vpop.f32.mrf.mxu1  ;;  %p1426_p0 = scmp.ne.s32.totalorder %s1174_s28, %s1425_s8  ;;  %p1431_p2 = scmp.lt.s32.totalorder %s1425_s8, %s1425_s8 }
  0xec   :  { %v627_v30 = vpop.f32.mrf.mxu1  ;;  %p1432_p3 = por %p1431_p2, %p1430_p1 }
  0xee   :  { %v1344_v31 = vpop.f32.mrf.mxu1  ;;  %p1433_p4 = pnand %p1432_p3, %p1426_p0 }
  0xf0   :  { %v630_v32 = vpop.f32.mrf.mxu1 }
  0xf2   :  { %v1345_v34 = vpop.f32.mrf.mxu1 }
  0xf3   :  { %v777_v34 = vrot.slane %v744_v27, %v776_v26 }
 0x103   :  { %v1327_v38 = vpop.f32.mrf.mxu0 }
 0x105   :  { %v1328_v39 = vpop.f32.mrf.mxu0 }
 0x106   :  { %v1329_v42 = vadd.f32 %v1328_v39, %v1327_v38 }
 0x107   :  { %v1330_v43 = vpop.f32.mrf.mxu0 }
 0x108   :  { %v580_v44 = vadd.f32 %v1329_v42, %v540_v40 }
 0x109   :  { %v1331_v46 = vpop.f32.mrf.mxu0 }
 0x10a   :  { %v628_v47 = vadd.f32 %v627_v30, %v580_v44  ;;  %v773_v30 = vrot.slane %v744_v27, %v772_v23 }
 0x10c   :  { %v640_v48 = vadd.f32 %v1234_v45, %v628_v47 }
 0x10e   :  { %v641_v49 = vmax.f32 %v640_v48, 0.0 }
 0x110   :  { %v642_v50 = vpack.c.bf16 %v641_v49, %v641_v49 }
 0x112   :  { %1355 = vmatmul.mubr.msk.bf16.vlgmr.msra.gmra.mxu1 %vm682_vm3, %v642_v50 }
 0x113   :  { %883 = vmatpush1.bf16.msra.mxu1 %v1249_v20  ;;  %902 = vmatprep.mubr.bf16.mxu1 %v1472_v1  ;;  %v1245_v20 = vcombine.low %v730_v11, %v734_v12 }
 0x114   :  { %884 = vmatprep.subr.bf16.mxu1 %v1242_v59 }
 0x117   :  { %885 = vmatpush1.bf16.msra.mxu1 %v1241_v58 }
 0x118   :  { %964 = vmatprep.subr.bf16.mxu1 %v1254_v4 }
 0x1d2   :  { %v720_v6 = vpop.f32.mrf.mxu1 }
 0x1d3   :  { %v721_v7 = vadd.f32 %v1235_v5, %v720_v6 }
 0x1d4   :  { %v1356_v9 = vpop.f32.mrf.mxu1 }
 0x1d5   :  { %v726_v13 = vmax.f32 %v721_v7, 0.0 }
 0x1d6   :  { %v723_v14 = vpop.f32.mrf.mxu1 }
 0x1d7   :  { %v727_v15 = vpack.c.bf16 %v726_v13, %v726_v13 }
 0x1d8   :  { %v1357_v18 = vpop.f32.mrf.mxu1 }
 0x1d9   :  { %1257 = vmatmul.mubr.msk.bf16.vlgmr.msra.gmra.mxu1 %vm866_vm4, %v727_v15  ;;  %1258 = vmatmul.mubr.msk.bf16.vlgmr.msra.gmra.mxu0 %vm866_vm4, %v727_v15 }
 0x1da   :  { %1006 = vmatpush1.bf16.msra.mxu0 %v1255_v2  ;;  %965 = vmatpush1.bf16.msra.mxu1 %v1253_v3 }
 0x1db   :  { %1007 = vmatprep.subr.bf16.mxu0 %v1248_v16  ;;  %966 = vmatprep.subr.bf16.mxu1 %v1246_v17 }
 0x1dc   :  { %984 = vmatprep.mubr.bf16.mxu1 %v1472_v1  ;;  %1025 = vmatprep.mubr.bf16.mxu0 %v1472_v1 }
 0x1de   :  { %1008 = vmatpush1.bf16.msra.mxu0 %v1247_v19  ;;  %967 = vmatpush1.bf16.msra.mxu1 %v1245_v20 }
 0x1e1   :  { %1259 = vmatmul.mubr.msk.bf16.vlgmr.msra.gmra.mxu1 %vm866_vm4, %v727_v15  ;;  %1260 = vmatmul.mubr.msk.bf16.vlgmr.msra.gmra.mxu0 %vm866_vm4, %v727_v15 }
 0x299   :  { %v1781_v21 = vpop.f32.mrf.mxu1  ;;  %v1783_v22 = vpop.f32.mrf.mxu0 }
 0x29b   :  { %v1786_v24 = vpop.f32.mrf.mxu1  ;;  %v1788_v25 = vpop.f32.mrf.mxu0 }
 0x29d   :  { %v908_v28 = vpop.f32.mrf.mxu1  ;;  %v949_v29 = vpop.f32.mrf.mxu0 }
 0x29f   :  { %v909_v31 = vpop.f32.mrf.mxu1  ;;  %v950_v32 = vpop.f32.mrf.mxu0 }
 0x2a1   :  { %v986_v35 = vpop.f32.mrf.mxu1  ;;  %v1027_v36 = vpop.f32.mrf.mxu0 }
 0x2a2   :  { %v1028_v38 = vadd.f32 %v1027_v36, %v773_v30 }
 0x2a3   :  { %v988_v39 = vpop.f32.mrf.mxu1  ;;  %v1029_v40 = vpop.f32.mrf.mxu0 }
 0x2a4   :  { %v1261_v42 = vmul.f32 -1.442695, %v1028_v38  ;;  %v1030_v43 = vadd.f32 %v1029_v40, %v777_v34 }
 0x2a5   :  { %v990_v44 = vpop.f32.mrf.mxu1  ;;  %v1031_v45 = vpop.f32.mrf.mxu0 }
 0x2a6   :  { %1417 = vpow2.f32 %v1261_v42  ;;  %v1262_v46 = vmul.f32 -1.442695, %v1030_v43  ;;  %v1147_v47 = vcombine.low %v1028_v38, %v1030_v43 }
 0x2a7   :  { %v991_v48 = vpop.f32.mrf.mxu1  ;;  %v1032_v49 = vpop.f32.mrf.mxu0 }
 0x2a8   :  { %1419 = vpow2.f32 %v1262_v46  ;;  %1266 = vst.sshfl [vmem:[#allocation4] sm:$0x33 pattern:$0x76325410] %v1147_v47 }
 0x2a9   :  { %1436 = shalt.err (!%p1433_p4)
}
 0x2aa   :  { %1176 = dma.vmem_to_hbm [thread:$0]  %s1174_s28, 64, %s1827_s10, [#allocation5]   ;;  %v748_v57 = vsub.s32 0, %v1634_v37  ;;  %v756_v58 = vsub.s32 2, %v1634_v37  ;;  %v752_v59 = vsub.s32 1, %v1634_v37  ;;  %v760_v60 = vsub.s32 3, %v1634_v37 }
 0x2ab   :  { %v764_v63 = vsub.s32 4, %v1634_v37  ;;  %v768_v0 = vsub.s32 5, %v1634_v37  ;;  %v1089_v1 = vrot.slane %v1629_v33, 4  ;;  %s1474_s10 = smov [#allocation2]  }
 0x2ac   :  { %v749_v3 = vrot.slane %v744_v27, %v748_v57  ;;  %v757_v4 = vrot.slane %v744_v27, %v756_v58  ;;  %v753_v5 = vrot.slane %v744_v27, %v752_v59  ;;  %v761_v6 = vrot.slane %v744_v27, %v760_v60  ;;  %s1163_s11 = sshll.u32 %s1474_s10, 4  ;;  %s1164_s11 = int_to_ptr.vmem [resolvable:$true] %s1163_s11 }
 0x2ad   :  { %v765_v8 = vrot.slane %v744_v27, %v764_v63  ;;  %v769_v9 = vrot.slane %v744_v27, %v768_v0  ;;  %s1445_s12 = scalar_lea.vmem %s1164_s11, 192  ;;  %p1450_p6 = scmp.lt.s32.totalorder %s1164_s11, %s1164_s11 }
 0x2ae   :  { %v905_v13 = vadd.f32 %v1781_v21, %v749_v3  ;;  %v946_v37 = vadd.f32 %v1783_v22, %v757_v4  ;;  %v907_v14 = vadd.f32 %v1786_v24, %v753_v5  ;;  %v948_v15 = vadd.f32 %v1788_v25, %v761_v6  ;;  %p1446_p5 = scmp.ne.s32.totalorder %s1164_s11, %s1445_s12  ;;  %p1451_p7 = scmp.lt.s32.totalorder %s1445_s12, %s1445_s12 }
 0x2af   :  { %v987_v19 = vadd.f32 %v986_v35, %v765_v8  ;;  %v989_v20 = vadd.f32 %v988_v39, %v769_v9 }
 0x2b0   :  { %p1452_p8 = por %p1451_p7, %p1450_p6 }
 0x2b2   :  { %p1453_p9 = pnand %p1452_p8, %p1446_p5 }
 0x2b3   :  { %v1418_v50 = vpop.eup %1417 }
 0x2b4   :  { %v1040_v51 = vadd.f32 1.0, %v1418_v50 }
 0x2b5   :  { %v1420_v52 = vpop.eup %1419 }
 0x2b6   :  { %1421 = vrcp.f32 %v1040_v51  ;;  %v1041_v53 = vadd.f32 1.0, %v1420_v52 }
 0x2b8   :  { %1423 = vrcp.f32 %v1041_v53 }
 0x2c3   :  { %v1422_v54 = vpop.eup %1421 }
 0x2c4   :  { %v1046_v61 = vsub.f32 1.0, %v1422_v54  ;;  %v1087_v23 = vmul.f32 %v1422_v54, %v946_v37  ;;  %v1117_v28 = vmul.f32 %v1422_v54, %v987_v19 }
 0x2c5   :  { %v1424_v56 = vpop.eup %1423 }
 0x2c6   :  { %v1047_v62 = vsub.f32 1.0, %v1424_v56  ;;  %v1049_v26 = vmul.f32 %v1424_v56, %v907_v14  ;;  %v1088_v27 = vmul.f32 %v1424_v56, %v948_v15  ;;  %v1118_v22 = vmul.f32 %v1424_v56, %v989_v20 }
 0x2c8   :  { %v1052_v2 = vcombine.low %v1046_v61, %v1047_v62 }
 0x2ca   :  { %v1059_v7 = vrot.slane %v1052_v2, %v1640_v41 }
 0x2cc   :  { %v1061_v10 = vmul.f32 %v1059_v7, %v1629_v33  ;;  %v1091_v11 = vmul.f32 %v1089_v1, %v1059_v7  ;;  %v1119_v12 = vmul.f32 %v1059_v7, %v1665_v55  ;;  %v1048_v33 = vmul.f32 %v1422_v54, %v905_v13 }
 0x2ce   :  { %v1069_v16 = vrot.slane %v1061_v10, %v1640_v41  ;;  %v1099_v17 = vrot.slane %v1091_v11, %v1640_v41  ;;  %v1127_v18 = vrot.slane %v1119_v12, %v1640_v41 }
 0x2d0   :  { %v1070_v55 = vcombine.high %v1069_v16, %v1069_v16  ;;  %v1100_v21 = vcombine.high %v1099_v17, %v1099_v17  ;;  %v1128_v29 = vcombine.high %v1127_v18, %v1127_v18  ;;  %v1073_v24 = vadd.f32 %v1069_v16, %v1048_v33 }
 0x2d1   :  { %v1103_v25 = vadd.f32 %v1099_v17, %v1087_v23  ;;  %v1131_v32 = vadd.f32 %v1127_v18, %v1117_v28 }
 0x2d2   :  { %v1074_v30 = vadd.f32 %v1070_v55, %v1049_v26  ;;  %v1104_v31 = vadd.f32 %v1100_v21, %v1088_v27  ;;  %v1132_v34 = vadd.f32 %v1128_v29, %v1118_v22 }
 0x2d4   :  { %v1077_v41 = vcombine.low %v1073_v24, %v1074_v30  ;;  %v1107_v35 = vcombine.low %v1103_v25, %v1104_v31  ;;  %v1135_v36 = vcombine.low %v1131_v32, %v1132_v34 }
 0x2d6   :  { %1263 = vst.sshfl [vmem:[#allocation2] sm:$0x33 pattern:$0x76325410] %v1077_v41 }
 0x2d7   :  { %1264 = vst.sshfl [vmem:[#allocation2 + $0x4] sm:$0x33 pattern:$0x76325410] %v1107_v35 }
 0x2d8   :  { %1265 = vst.sshfl [vmem:[#allocation2 + $0x8] sm:$0x33 pattern:$0x76325410] %v1135_v36 }
 0x2d9   :  { %1456 = shalt.err (!%p1453_p9)
}
 0x2da   :  { %1166 = dma.vmem_to_hbm [thread:$0]  %s1164_s11, 192, %s1826_s9, [#allocation3]  }
 0x2db   :  { %1465 = dma.done.wait [#allocation3], 192  }
 0x2dc   :  { %1466 = vsyncadd [#allocation3], 4294967104 }
 0x2dd   :  { %1467 = dma.done.wait [#allocation5], 64  }
 0x2de   :  { %1468 = vsyncadd [#allocation5], 4294967232 }
 0x2df   :  { %1183 = vsyncpa [#allocation3], 1 }
 0x2e0   :  { %1184 = vsyncpa [#allocation5], 1 }

</bundles_post_ra>
